<compile_context>
chip_gen: v5e
topology: v5e:2x2
jax: 0.10.0
libtpu: 0.0.40
codegen_flags: <defaults>
</compile_context>

<pallas_src>
import functools
import math

import jax
import jax.numpy as jnp
from jax.experimental import pallas as pl
from jax.experimental.pallas import tpu as pltpu

N_FFT = 512
HOP = 256
WIN = 256
EPS = 1e-5
N_HALF = N_FFT // 2          # bins k = 0..255 handled by the [cos | sin] blocks
N_FREQ = N_FFT // 2 + 1      # 257 onesided bins (k = 256 is the Nyquist bin)
NYQ_BLOCK = 128              # lane-aligned extra basis block holding the Nyquist col
BASIS_W = 2 * N_HALF + NYQ_BLOCK   # 640
LPAD = (N_FFT - WIN) // 2    # offset of the 256-sample window inside the n_fft frame
FRONT = N_FFT // 2 - LPAD    # left shift of the central window w.r.t. the raw signal


def _round_up(x, m):
    return ((x + m - 1) // m) * m


def _stft_loss_kernel(frames_ref, basis_ref, out_ref, *, tm, m_valid):
    pid = pl.program_id(0)
    # (2, tm, WIN) -> (2*tm, WIN): leading-dim collapse, no layout change.
    # Rows 0..tm-1 are pred frames, rows tm..2*tm-1 are true frames.
    x = frames_ref[...].reshape(2 * tm, WIN)

    # Single MXU matmul for BOTH signals against the shared windowed basis
    # [win*cos | win*sin | win*(-1)^n, zeros...]; f32 accumulation.
    spec = jnp.dot(x, basis_ref[...], preferred_element_type=jnp.float32)  # (2*tm, 640)

    p_spec = spec[:tm]
    t_spec = spec[tm:]
    p_c, p_s = p_spec[:, :N_HALF], p_spec[:, N_HALF:2 * N_HALF]
    t_c, t_s = t_spec[:, :N_HALF], t_spec[:, N_HALF:2 * N_HALF]
    p_ny = p_spec[:, 2 * N_HALF:2 * N_HALF + 1]   # Nyquist real part (imag == 0)
    t_ny = t_spec[:, 2 * N_HALF:2 * N_HALF + 1]

    # torch adds eps to the complex pred spectrum -> real part only; imag sign
    # is irrelevant under the square.
    p_pow = (p_c + EPS) ** 2 + p_s ** 2 + EPS
    t_pow = t_c ** 2 + t_s ** 2 + EPS
    d = jnp.log(p_pow) - jnp.log(t_pow)                       # EUP logs, VPU subtract
    d_ny = jnp.log((p_ny + EPS) ** 2 + EPS) - jnp.log(t_ny ** 2 + EPS)

    # Mask padded rows with a cheap (tm,1) compare broadcast over lanes, then a
    # single whole-tile reduce (no per-row lane reductions on the XLU slots).
    rows = pid * tm + jax.lax.broadcasted_iota(jnp.int32, (tm, 1), 0)
    valid = rows < m_valid
    dsq = jnp.where(valid, d * d, 0.0)
    dnysq = jnp.where(valid, d_ny * d_ny, 0.0)
    out_ref[0, 0] = jnp.sum(dsq) + jnp.sum(dnysq)


def _hann():
    # torch.hann_window(WIN) (periodic): 0.5 * (1 - cos(2*pi*j/WIN))
    j = jnp.arange(WIN, dtype=jnp.float32)
    return 0.5 - 0.5 * jnp.cos(2.0 * math.pi * j / WIN)


def _windowed_basis():
    """(WIN, 640) bf16 basis: [win*cos(k=0..255) | win*sin(k=0..255) | win*(-1)^n | 0]."""
    hann = _hann()
    n = jnp.arange(WIN, dtype=jnp.int32) + LPAD          # sample index inside n_fft frame
    k = jnp.arange(N_HALF, dtype=jnp.int32)              # 0..255
    nk = (n[:, None] * k[None, :]) % N_FFT               # exact integer phase
    ang = (2.0 * math.pi / N_FFT) * nk.astype(jnp.float32)
    cosb = hann[:, None] * jnp.cos(ang)
    sinb = hann[:, None] * jnp.sin(ang)
    sign = jnp.where((n % 2) == 0, 1.0, -1.0)            # cos(pi*n) -> Nyquist cos column
    nyq = (hann * sign)[:, None]                          # (WIN, 1)
    zpad = jnp.zeros((WIN, NYQ_BLOCK - 1), jnp.float32)
    return jnp.concatenate([cosb, sinb, nyq, zpad], axis=1).astype(jnp.bfloat16)


def _frames_central(x, n_frames):
    """(B, T) -> (B*n_frames, WIN): only the non-zero-window part of each frame.

    With center=True / constant pad and HOP == WIN, consecutive central windows
    tile the shifted signal exactly, so framing is pad + reshape (no gather)."""
    b, t = x.shape
    total = n_frames * WIN
    pad_r = max(0, total - (t + FRONT))
    y = jnp.pad(x, ((0, 0), (FRONT, pad_r)))[:, :total]
    return y.reshape(b * n_frames, WIN)


def _pick_tm(m):
    """Rows per tile: big tiles to amortize per-step overhead, >=2 tiles when
    the workload is large enough so both v7x TensorCores get work."""
    if m <= 512:
        return _round_up(m, 16)
    if m <= 2048:
        return _round_up((m + 1) // 2, 16)
    return 1024


def stft_loss(pred, true):
    """pred, true: (B, 1, T) float32 -> scalar float32 loss."""
    pred = pred[:, 0, :].astype(jnp.float32)
    true = true[:, 0, :].astype(jnp.float32)
    b, t = pred.shape
    n_frames = t // HOP + 1
    m = b * n_frames

    basis = _windowed_basis()
    # TODO(synk): the wrapper framing materializes a bf16 framed copy of both
    # signals; on mem-bound chips (v5e/v6e) this could be replaced by in-kernel
    # manual DMA framing (memory_space=pl.ANY + make_async_copy).
    pf = _frames_central(pred, n_frames).astype(jnp.bfloat16)
    tf = _frames_central(true, n_frames).astype(jnp.bfloat16)

    tm = _pick_tm(m)
    m_pad = _round_up(m, tm)
    if m_pad != m:
        pf = jnp.pad(pf, ((0, m_pad - m), (0, 0)))
        tf = jnp.pad(tf, ((0, m_pad - m), (0, 0)))
    frames = jnp.stack([pf, tf], axis=0)               # (2, m_pad, WIN)
    num_tiles = m_pad // tm

    kernel = functools.partial(_stft_loss_kernel, tm=tm, m_valid=m)
    partials = pl.pallas_call(
        kernel,
        out_shape=jax.ShapeDtypeStruct((num_tiles, 1), jnp.float32),
        grid=(num_tiles,),
        in_specs=[
            pl.BlockSpec((2, tm, WIN), lambda i: (0, i, 0)),      # stacked frames
            pl.BlockSpec((WIN, BASIS_W), lambda i: (0, 0)),       # [cos|sin|nyq] basis
        ],
        out_specs=pl.BlockSpec((1, 1), lambda i: (i, 0),
                               memory_space=pltpu.MemorySpace.SMEM),
        compiler_params=pltpu.CompilerParams(
            dimension_semantics=("parallel",),
            vmem_limit_bytes=32 * 1024 * 1024),
    )(frames, basis)
    return jnp.sum(partials) / (m * N_FREQ)


# ---------------------------------------------------------------------------
# Pure-JAX reference (rfft-based, f32, independent code path) for the check.
# ---------------------------------------------------------------------------
def _hann_window_padded():
    hann = _hann()
    return jnp.zeros((N_FFT,), jnp.float32).at[LPAD:LPAD + WIN].set(hann)


def _frame_full(x, n_frames):
    xp = jnp.pad(x, ((0, 0), (N_FFT // 2, N_FFT // 2)))
    idx = jnp.arange(n_frames)[:, None] * HOP + jnp.arange(N_FFT)[None, :]
    return xp[:, idx].reshape(x.shape[0] * n_frames, N_FFT)


def stft_loss_ref(pred, true):
    pred = pred[:, 0, :]
    true = true[:, 0, :]
    b, t = pred.shape
    n_frames = t // HOP + 1
    window = _hann_window_padded()
    pf = _frame_full(pred, n_frames) * window[None, :]
    tf = _frame_full(true, n_frames) * window[None, :]
    p_spec = jnp.fft.rfft(pf, n=N_FFT, axis=-1) + EPS
    t_spec = jnp.fft.rfft(tf, n=N_FFT, axis=-1)
    p_pow = jnp.real(p_spec) ** 2 + jnp.imag(p_spec) ** 2 + EPS
    t_pow = jnp.real(t_spec) ** 2 + jnp.imag(t_spec) ** 2 + EPS
    return jnp.mean((jnp.log(p_pow) - jnp.log(t_pow)) ** 2)


if __name__ == "__main__":
    key = jax.random.PRNGKey(0)
    k1, k2 = jax.random.split(key)
    B, T = 2, 1024  # n_frames = 5, n_freq = 257
    pred = jax.random.normal(k1, (B, 1, T), dtype=jnp.float32)
    true = jax.random.normal(k2, (B, 1, T), dtype=jnp.float32)

    loss = jax.block_until_ready(stft_loss(pred, true))
    ref = jax.block_until_ready(stft_loss_ref(pred, true))

    assert abs(float(loss) - float(ref)) <= 2e-2 * max(1.0, abs(float(ref))), (
        float(loss), float(ref))
    print("KERNEL_OK")
</pallas_src>

<mosaic_0001>
module attributes {stable_mosaic.version = 11 : i64} {
  func.func @_stft_loss_kernel(%arg0: i32, %arg1: memref<2x16x256xbf16, #tpu.memory_space<vmem>>, %arg2: memref<256x640xbf16, #tpu.memory_space<vmem>>, %arg3: memref<1x1xf32, #tpu.memory_space<smem>>) attributes {dimension_semantics = [#tpu.dimension_semantics<parallel>], iteration_bounds = array<i64: 1>, scalar_prefetch = 0 : i64, scratch_operands = 0 : i64, tpu.core_type = #tpu.core_type<tc>, window_params = [{transform_indices = @transform_0, window_bounds = array<i64: 2, 16, 256>}, {pipeline_mode = #tpu.pipeline_mode<synchronous>, transform_indices = @transform_1, window_bounds = array<i64: 256, 640>}, {transform_indices = @transform_2, window_bounds = array<i64: 1, 1>}]} {
    %c0 = arith.constant 0 : index
    %c0_0 = arith.constant 0 : index
    %c0_1 = arith.constant 0 : index
    %0 = vector.load %arg1[%c0, %c0_0, %c0_1] : memref<2x16x256xbf16, #tpu.memory_space<vmem>>, vector<2x16x256xbf16>
    %1 = vector.shape_cast %0 : vector<2x16x256xbf16> to vector<32x256xbf16>
    %c0_2 = arith.constant 0 : index
    %c0_3 = arith.constant 0 : index
    %2 = vector.load %arg2[%c0_2, %c0_3] : memref<256x640xbf16, #tpu.memory_space<vmem>>, vector<256x640xbf16>
    %cst = arith.constant dense<0.000000e+00> : vector<32x640xf32>
    %3 = tpu.matmul %1, %2, %cst {dimension_numbers = #tpu.dot_dimension_numbers<[1], [0], [0], [1], [0, 0, 1, 1], [], []>} : vector<32x256xbf16>, vector<256x640xbf16>, vector<32x640xf32> -> vector<32x640xf32>
    %4 = vector.extract_strided_slice %3 {offsets = [0, 0], sizes = [16, 640], strides = [1, 1]} : vector<32x640xf32> to vector<16x640xf32>
    %5 = vector.extract_strided_slice %3 {offsets = [16, 0], sizes = [16, 640], strides = [1, 1]} : vector<32x640xf32> to vector<16x640xf32>
    %6 = vector.extract_strided_slice %4 {offsets = [0, 0], sizes = [16, 256], strides = [1, 1]} : vector<16x640xf32> to vector<16x256xf32>
    %7 = vector.extract_strided_slice %4 {offsets = [0, 256], sizes = [16, 256], strides = [1, 1]} : vector<16x640xf32> to vector<16x256xf32>
    %8 = vector.extract_strided_slice %5 {offsets = [0, 0], sizes = [16, 256], strides = [1, 1]} : vector<16x640xf32> to vector<16x256xf32>
    %9 = vector.extract_strided_slice %5 {offsets = [0, 256], sizes = [16, 256], strides = [1, 1]} : vector<16x640xf32> to vector<16x256xf32>
    %10 = vector.extract_strided_slice %4 {offsets = [0, 512], sizes = [16, 1], strides = [1, 1]} : vector<16x640xf32> to vector<16x1xf32>
    %11 = vector.extract_strided_slice %5 {offsets = [0, 512], sizes = [16, 1], strides = [1, 1]} : vector<16x640xf32> to vector<16x1xf32>
    %cst_4 = arith.constant 9.99999974E-6 : f32
    %12 = vector.broadcast %cst_4 : f32 to vector<16x256xf32>
    %13 = arith.addf %6, %12 : vector<16x256xf32>
    %14 = arith.mulf %13, %13 : vector<16x256xf32>
    %15 = arith.mulf %7, %7 : vector<16x256xf32>
    %16 = arith.addf %14, %15 : vector<16x256xf32>
    %cst_5 = arith.constant 9.99999974E-6 : f32
    %17 = vector.broadcast %cst_5 : f32 to vector<16x256xf32>
    %18 = arith.addf %16, %17 : vector<16x256xf32>
    %19 = arith.mulf %8, %8 : vector<16x256xf32>
    %20 = arith.mulf %9, %9 : vector<16x256xf32>
    %21 = arith.addf %19, %20 : vector<16x256xf32>
    %cst_6 = arith.constant 9.99999974E-6 : f32
    %22 = vector.broadcast %cst_6 : f32 to vector<16x256xf32>
    %23 = arith.addf %21, %22 : vector<16x256xf32>
    %24 = math.log %18 : vector<16x256xf32>
    %25 = math.log %23 : vector<16x256xf32>
    %26 = arith.subf %24, %25 : vector<16x256xf32>
    %cst_7 = arith.constant 9.99999974E-6 : f32
    %27 = vector.broadcast %cst_7 : f32 to vector<16x1xf32>
    %28 = arith.addf %10, %27 : vector<16x1xf32>
    %29 = arith.mulf %28, %28 : vector<16x1xf32>
    %cst_8 = arith.constant 9.99999974E-6 : f32
    %30 = vector.broadcast %cst_8 : f32 to vector<16x1xf32>
    %31 = arith.addf %29, %30 : vector<16x1xf32>
    %32 = math.log %31 : vector<16x1xf32>
    %33 = arith.mulf %11, %11 : vector<16x1xf32>
    %cst_9 = arith.constant 9.99999974E-6 : f32
    %34 = vector.broadcast %cst_9 : f32 to vector<16x1xf32>
    %35 = arith.addf %33, %34 : vector<16x1xf32>
    %36 = math.log %35 : vector<16x1xf32>
    %37 = arith.subf %32, %36 : vector<16x1xf32>
    %c16_i32 = arith.constant 16 : i32
    %38 = arith.muli %arg0, %c16_i32 : i32
    %39 = tpu.iota {dimensions = array<i32: 0>} : vector<16x1xi32>
    %40 = vector.broadcast %38 : i32 to vector<16x1xi32>
    %41 = arith.addi %40, %39 : vector<16x1xi32>
    %c10_i32 = arith.constant 10 : i32
    %42 = vector.broadcast %c10_i32 : i32 to vector<16x1xi32>
    %43 = arith.cmpi slt, %41, %42 : vector<16x1xi32>
    %44 = arith.mulf %26, %26 : vector<16x256xf32>
    %cst_10 = arith.constant 0.000000e+00 : f32
    %45 = vector.shape_cast %43 : vector<16x1xi1> to vector<16x1xi1>
    %46 = vector.broadcast %45 : vector<16x1xi1> to vector<16x256xi1>
    %47 = vector.broadcast %cst_10 : f32 to vector<16x256xf32>
    %48 = arith.select %46, %44, %47 : vector<16x256xi1>, vector<16x256xf32>
    %49 = arith.mulf %37, %37 : vector<16x1xf32>
    %cst_11 = arith.constant 0.000000e+00 : f32
    %50 = vector.broadcast %cst_11 : f32 to vector<16x1xf32>
    %51 = arith.select %43, %49, %50 : vector<16x1xi1>, vector<16x1xf32>
    %52 = vector.shape_cast %48 : vector<16x256xf32> to vector<1x16x256xf32>
    %cst_12 = arith.constant dense<0.000000e+00> : vector<1xf32>
    %53 = vector.multi_reduction <add>, %52, %cst_12 [1, 2] : vector<1x16x256xf32> to vector<1xf32>
    %54 = vector.shape_cast %53 : vector<1xf32> to vector<1x1x1xf32>
    %55 = vector.extract %54[0, 0, 0] : f32 from vector<1x1x1xf32>
    %56 = vector.shape_cast %51 : vector<16x1xf32> to vector<1x16x1xf32>
    %cst_13 = arith.constant dense<0.000000e+00> : vector<1xf32>
    %57 = vector.multi_reduction <add>, %56, %cst_13 [1, 2] : vector<1x16x1xf32> to vector<1xf32>
    %58 = vector.shape_cast %57 : vector<1xf32> to vector<1x1x1xf32>
    %59 = vector.extract %58[0, 0, 0] : f32 from vector<1x1x1xf32>
    %60 = arith.addf %55, %59 : f32
    %c0_14 = arith.constant 0 : index
    %c0_15 = arith.constant 0 : index
    %61 = memref.load %arg3[%c0_14, %c0_15] : memref<1x1xf32, #tpu.memory_space<smem>>
    memref.store %60, %arg3[%c0_14, %c0_15] : memref<1x1xf32, #tpu.memory_space<smem>>
    return
  }
  func.func @transform_0(%arg0: i32) -> (i32, i32, i32) {
    %c0_i32 = arith.constant 0 : i32
    %c0_i32_0 = arith.constant 0 : i32
    %c0_i32_1 = arith.constant 0 : i32
    return %c0_i32, %arg0, %c0_i32_0 : i32, i32, i32
  }
  func.func @transform_1(%arg0: i32) -> (i32, i32) {
    %c0_i32 = arith.constant 0 : i32
    %c0_i32_0 = arith.constant 0 : i32
    %c0_i32_1 = arith.constant 0 : i32
    return %c0_i32, %c0_i32_0 : i32, i32
  }
  func.func @transform_2(%arg0: i32) -> (i32, i32) {
    %c0_i32 = arith.constant 0 : i32
    %c0_i32_0 = arith.constant 0 : i32
    return %arg0, %c0_i32 : i32, i32
  }
}

</mosaic_0001>

<bundles_post_ra>
// kernel: tpu_custom_call.1
= control target key start
LH: loop header
LB: loop body
LE: loop exit
PB: predicated region body
PF: predicated region fallthrough
CT: control target
= control target key end

     0   :  { %7 = vsyncpa [#allocation3], 0  ;;  %s1515_s0 = inlined_call_operand.hbm [shape: bf16[2,16,256], index: 0, kind: input, shape index: {}]   ;;  %s1516_s1 = inlined_call_operand.hbm [shape: bf16[256,640], index: 1, kind: input, shape index: {}]   ;;  %s1517_s2 = inlined_call_operand.hbm [shape: f32[1,1], index: 2, kind: output, shape index: {}]  }
   0x1   :  { %8 = vsyncpa [#allocation6], 0 }
   0x2   :  { %9 = vsyncpa [#allocation4], 0  ;;  %s14_s11 = sshll.u32 %s1515_s0, 4  ;;  %s1453_s12 = smov [#allocation2]   ;;  %s15_s11 = int_to_ptr.hbm [resolvable:$true] %s14_s11 }
   0x3   :  { %s16_s13 = sshll.u32 %s1453_s12, 4  ;;  %s27_s16 = sshll.u32 %s1516_s1, 4  ;;  %s17_s13 = int_to_ptr.vmem [resolvable:$true] %s16_s13  ;;  %s28_s16 = int_to_ptr.hbm [resolvable:$true] %s27_s16 }
   0x4   :  { %s1454_s17 = smov 128   ;;  %s1455_s18 = smov 8  }
   0x5   :  { %22 = dma.hbm_to_vmem [thread:$0]  %s15_s11, 512, %s17_s13, [#allocation3], %s1454_s17, %s1454_s17, %s1455_s18  }
   0x6   :  { %s1456_s19 = smov [#allocation5]   ;;  %s1457_s21 = smov 320  }
   0x7   :  { %s29_s20 = sshll.u32 %s1456_s19, 4  ;;  %s1458_s22 = smov 20   ;;  %s30_s20 = int_to_ptr.vmem [resolvable:$true] %s29_s20 }
   0x8   :  { %35 = dma.hbm_to_vmem [thread:$0]  %s28_s16, 10240, %s30_s20, [#allocation6], %s1457_s21, %s1457_s21, %s1458_s22  }
   0x9   :  { %1447 = dma.done.wait [#allocation3], 512  }
   0xa   :  { %1448 = vsyncadd [#allocation3], 4294966784 }
   0xb   :  { %1449 = dma.done.wait [#allocation6], 10240  }
   0xc   :  { %1450 = vsyncadd [#allocation6], 4294957056  ;;  %v1074_v0 = vld [vmem:[#allocation5 + $0x118] sm:$0xf]  ;;  %v1293_v1 = vld [vmem:[#allocation5 + $0x128] sm:$0xf0] }
   0xd   :  { %v1234_v2 = vld [vmem:[#allocation5 + $0x258] sm:$0xf]  ;;  %v1075_v3 = vor.u32 %v1293_v1, %v1074_v0  ;;  %v1333_v4 = vld [vmem:[#allocation5 + $0x268] sm:$0xf0]  ;;  %v1291_v5 = vld [vmem:[#allocation5 + $0x11c] sm:$0xf] }
   0xe   :  { %v1076_v6 = vld [vmem:[#allocation5 + $0x12c] sm:$0xf0]  ;;  %v1235_v7 = vor.u32 %v1333_v4, %v1234_v2  ;;  %v1331_v9 = vld [vmem:[#allocation5 + $0x25c] sm:$0xf]  ;;  %v1288_v13 = vld [vmem:[#allocation5 + $0x100] sm:$0xf0] }
   0xf   :  { %v1079_v8 = vor.u32 %v1291_v5, %v1076_v6  ;;  %v1236_v10 = vld [vmem:[#allocation5 + $0x26c] sm:$0xf0]  ;;  %580 = vmatpush.bf16.msra.mxu0 %v1075_v3  ;;  %v1328_v15 = vld [vmem:[#allocation5 + $0x240] sm:$0xf0]  ;;  %v1286_v18 = vld [vmem:[#allocation5 + $0xf4] sm:$0xf] }
  0x10   :  { %v1054_v11 = vld [vmem:[#allocation5 + $0xf0] sm:$0xf]  ;;  %v1239_v12 = vor.u32 %v1331_v9, %v1236_v10  ;;  %599 = vmatpush.bf16.msra.mxu1 %v1235_v7  ;;  %v1056_v19 = vld [vmem:[#allocation5 + $0x104] sm:$0xf0]  ;;  %v1326_v20 = vld [vmem:[#allocation5 + $0x234] sm:$0xf] }
  0x11   :  { %v1214_v14 = vld [vmem:[#allocation5 + $0x230] sm:$0xf]  ;;  %618 = vmatpush.bf16.msra.mxu2 %v1079_v8  ;;  %v1055_v16 = vor.u32 %v1288_v13, %v1054_v11  ;;  %v1059_v21 = vor.u32 %v1286_v18, %v1056_v19  ;;  %v1216_v22 = vld [vmem:[#allocation5 + $0x244] sm:$0xf0]  ;;  %v1283_v24 = vld [vmem:[#allocation5 + $0xd8] sm:$0xf0] }
  0x12   :  { %v1215_v17 = vor.u32 %v1328_v15, %v1214_v14  ;;  %637 = vmatpush.bf16.msra.mxu3 %v1239_v12  ;;  %v1034_v23 = vld [vmem:[#allocation5 + $0xc8] sm:$0xf]  ;;  %v1219_v25 = vor.u32 %v1326_v20, %v1216_v22  ;;  %v1323_v27 = vld [vmem:[#allocation5 + $0x218] sm:$0xf0]  ;;  %v1281_v28 = vld [vmem:[#allocation5 + $0xcc] sm:$0xf] }
  0x13   :  { %v1194_v26 = vld [vmem:[#allocation5 + $0x208] sm:$0xf]  ;;  %581 = vmatpush.bf16.msra.mxu0 %v1055_v16  ;;  %v1035_v29 = vor.u32 %v1283_v24, %v1034_v23  ;;  %v1036_v30 = vld [vmem:[#allocation5 + $0xdc] sm:$0xf0]  ;;  %v1321_v31 = vld [vmem:[#allocation5 + $0x20c] sm:$0xf] }
  0x14   :  { %v1196_v32 = vld [vmem:[#allocation5 + $0x21c] sm:$0xf0]  ;;  %600 = vmatpush.bf16.msra.mxu1 %v1215_v17  ;;  %v1195_v33 = vor.u32 %v1323_v27, %v1194_v26  ;;  %v1039_v34 = vor.u32 %v1281_v28, %v1036_v30  ;;  %v1278_v36 = vld [vmem:[#allocation5 + $0xb0] sm:$0xf0]  ;;  %v1276_v40 = vld [vmem:[#allocation5 + $0xa4] sm:$0xf] }
  0x15   :  { %619 = vmatpush.bf16.msra.mxu2 %v1059_v21  ;;  %v1014_v35 = vld [vmem:[#allocation5 + $0xa0] sm:$0xf]  ;;  %v1199_v38 = vor.u32 %v1321_v31, %v1196_v32  ;;  %v1318_v39 = vld [vmem:[#allocation5 + $0x1f0] sm:$0xf0]  ;;  %v1016_v41 = vld [vmem:[#allocation5 + $0xb4] sm:$0xf0] }
  0x16   :  { %v1174_v37 = vld [vmem:[#allocation5 + $0x1e0] sm:$0xf]  ;;  %638 = vmatpush.bf16.msra.mxu3 %v1219_v25  ;;  %v1316_v42 = vld [vmem:[#allocation5 + $0x1e4] sm:$0xf]  ;;  %v1176_v43 = vld [vmem:[#allocation5 + $0x1f4] sm:$0xf0]  ;;  %v1015_v44 = vor.u32 %v1278_v36, %v1014_v35  ;;  %v1019_v46 = vor.u32 %v1276_v40, %v1016_v41 }
  0x17   :  { %582 = vmatpush.bf16.msra.mxu0 %v1035_v29  ;;  %v1175_v45 = vor.u32 %v1318_v39, %v1174_v37  ;;  %v994_v47 = vld [vmem:[#allocation5 + $0x78] sm:$0xf]  ;;  %v1273_v48 = vld [vmem:[#allocation5 + $0x88] sm:$0xf0]  ;;  %v1179_v50 = vor.u32 %v1316_v42, %v1176_v43  ;;  %v1271_v52 = vld [vmem:[#allocation5 + $0x7c] sm:$0xf] }
  0x18   :  { %601 = vmatpush.bf16.msra.mxu1 %v1195_v33  ;;  %v1154_v49 = vld [vmem:[#allocation5 + $0x1b8] sm:$0xf]  ;;  %v1313_v51 = vld [vmem:[#allocation5 + $0x1c8] sm:$0xf0]  ;;  %v996_v53 = vld [vmem:[#allocation5 + $0x8c] sm:$0xf0]  ;;  %v995_v56 = vor.u32 %v1273_v48, %v994_v47 }
  0x19   :  { %620 = vmatpush.bf16.msra.mxu2 %v1039_v34  ;;  %v1311_v54 = vld [vmem:[#allocation5 + $0x1bc] sm:$0xf]  ;;  %v1156_v55 = vld [vmem:[#allocation5 + $0x1cc] sm:$0xf0]  ;;  %v1155_v57 = vor.u32 %v1313_v51, %v1154_v49  ;;  %v999_v58 = vor.u32 %v1271_v52, %v996_v53  ;;  %v1268_v60 = vld [vmem:[#allocation5 + $0x60] sm:$0xf0] }
  0x1a   :  { %639 = vmatpush.bf16.msra.mxu3 %v1199_v38  ;;  %v974_v59 = vld [vmem:[#allocation5 + $0x50] sm:$0xf]  ;;  %v1159_v62 = vor.u32 %v1311_v54, %v1156_v55  ;;  %v1308_v63 = vld [vmem:[#allocation5 + $0x1a0] sm:$0xf0]  ;;  %v1266_v0 = vld [vmem:[#allocation5 + $0x54] sm:$0xf] }
  0x1b   :  { %583 = vmatpush.bf16.msra.mxu0 %v1015_v44  ;;  %v1134_v61 = vld [vmem:[#allocation5 + $0x190] sm:$0xf]  ;;  %v976_v1 = vld [vmem:[#allocation5 + $0x64] sm:$0xf0]  ;;  %v1306_v2 = vld [vmem:[#allocation5 + $0x194] sm:$0xf]  ;;  %v975_v4 = vor.u32 %v1268_v60, %v974_v59 }
  0x1c   :  { %602 = vmatpush.bf16.msra.mxu1 %v1175_v45  ;;  %v1136_v3 = vld [vmem:[#allocation5 + $0x1a4] sm:$0xf0]  ;;  %v1135_v5 = vor.u32 %v1308_v63, %v1134_v61  ;;  %v979_v6 = vor.u32 %v1266_v0, %v976_v1  ;;  %v1263_v8 = vld [vmem:[#allocation5 + $0x38] sm:$0xf0]  ;;  %v1261_v12 = vld [vmem:[#allocation5 + $0x2c] sm:$0xf] }
  0x1d   :  { %621 = vmatpush.bf16.msra.mxu2 %v1019_v46  ;;  %v954_v7 = vld [vmem:[#allocation5 + $0x28] sm:$0xf]  ;;  %v1139_v10 = vor.u32 %v1306_v2, %v1136_v3  ;;  %v1303_v11 = vld [vmem:[#allocation5 + $0x178] sm:$0xf0]  ;;  %v956_v13 = vld [vmem:[#allocation5 + $0x3c] sm:$0xf0] }
  0x1e   :  { %640 = vmatpush.bf16.msra.mxu3 %v1179_v50  ;;  %v1114_v9 = vld [vmem:[#allocation5 + $0x168] sm:$0xf]  ;;  %v1301_v14 = vld [vmem:[#allocation5 + $0x16c] sm:$0xf]  ;;  %v1116_v15 = vld [vmem:[#allocation5 + $0x17c] sm:$0xf0]  ;;  %v955_v16 = vor.u32 %v1263_v8, %v954_v7  ;;  %v959_v20 = vor.u32 %v1261_v12, %v956_v13 }
  0x1f   :  { %584 = vmatpush.bf16.msra.mxu0 %v995_v56  ;;  %v934_v17 = vld [vmem:[#allocation5] sm:$0xf]  ;;  %v1258_v18 = vld [vmem:[#allocation5 + $0x10] sm:$0xf0]  ;;  %v1115_v19 = vor.u32 %v1303_v11, %v1114_v9  ;;  %v1256_v23 = vld [vmem:[#allocation5 + $0x4] sm:$0xf]  ;;  %v1119_v24 = vor.u32 %v1301_v14, %v1116_v15 }
  0x20   :  { %603 = vmatpush.bf16.msra.mxu1 %v1155_v57  ;;  %v1094_v21 = vld [vmem:[#allocation5 + $0x140] sm:$0xf]  ;;  %v1298_v22 = vld [vmem:[#allocation5 + $0x150] sm:$0xf0]  ;;  %v936_v25 = vld [vmem:[#allocation5 + $0x14] sm:$0xf0]  ;;  %v935_v31 = vor.u32 %v1258_v18, %v934_v17 }
  0x21   :  { %622 = vmatpush.bf16.msra.mxu2 %v999_v58  ;;  %v1296_v26 = vld [vmem:[#allocation5 + $0x144] sm:$0xf]  ;;  %v1096_v27 = vld [vmem:[#allocation5 + $0x154] sm:$0xf0]  ;;  %v918_v28 = vld [vmem:[#allocation2] sm:$0xf]  ;;  %v1095_v35 = vor.u32 %v1298_v22, %v1094_v21  ;;  %v939_v36 = vor.u32 %v1256_v23, %v936_v25 }
  0x22   :  { %641 = vmatpush.bf16.msra.mxu3 %v1159_v62  ;;  %v1292_v29 = vld [vmem:[#allocation5 + $0x124] sm:$0xf]  ;;  %v1084_v30 = vld [vmem:[#allocation5 + $0x134] sm:$0xf0]  ;;  %v1253_v32 = vld [vmem:[#allocation2 + $0x4] sm:$0xf0]  ;;  %v1099_v39 = vor.u32 %v1296_v26, %v1096_v27 }
  0x23   :  { %585 = vmatpush.bf16.msra.mxu0 %v975_v4  ;;  %v1332_v33 = vld [vmem:[#allocation5 + $0x264] sm:$0xf]  ;;  %v1244_v34 = vld [vmem:[#allocation5 + $0x274] sm:$0xf0]  ;;  %v920_v38 = vld [vmem:[#allocation2 + $0x8] sm:$0xf0]  ;;  %v1087_v40 = vor.u32 %v1292_v29, %v1084_v30  ;;  %v1481_v44 = vor.u32 %v1253_v32, %v918_v28 }
  0x24   :  { %604 = vmatpush.bf16.msra.mxu1 %v1135_v5  ;;  %v1252_v37 = vld [vmem:[#allocation2 + $0x4] sm:$0xf]  ;;  %v1082_v41 = vld [vmem:[#allocation5 + $0x120] sm:$0xf]  ;;  %v1294_v42 = vld [vmem:[#allocation5 + $0x130] sm:$0xf0]  ;;  %v1247_v45 = vor.u32 %v1332_v33, %v1244_v34 }
  0x25   :  { %623 = vmatpush.bf16.msra.mxu2 %v979_v6  ;;  %v1242_v43 = vld [vmem:[#allocation5 + $0x260] sm:$0xf]  ;;  %v1334_v46 = vld [vmem:[#allocation5 + $0x270] sm:$0xf0]  ;;  %v1287_v47 = vld [vmem:[#allocation5 + $0xfc] sm:$0xf]  ;;  %v1483_v49 = vor.u32 %v1252_v37, %v920_v38  ;;  %v1083_v52 = vor.u32 %v1294_v42, %v1082_v41 }
  0x26   :  { %642 = vmatpush.bf16.msra.mxu3 %v1139_v10  ;;  %v1064_v48 = vld [vmem:[#allocation5 + $0x10c] sm:$0xf0]  ;;  %v1327_v50 = vld [vmem:[#allocation5 + $0x23c] sm:$0xf]  ;;  %v1243_v53 = vor.u32 %v1334_v46, %v1242_v43  ;;  %v1062_v55 = vld [vmem:[#allocation5 + $0xf8] sm:$0xf] }
  0x27   :  { %586 = vmatpush.bf16.msra.mxu0 %v955_v16  ;;  %v1224_v51 = vld [vmem:[#allocation5 + $0x24c] sm:$0xf0]  ;;  %v1067_v54 = vor.u32 %v1287_v47, %v1064_v48  ;;  %v1289_v56 = vld [vmem:[#allocation5 + $0x108] sm:$0xf0]  ;;  %v1222_v57 = vld [vmem:[#allocation5 + $0x238] sm:$0xf] }
  0x28   :  { %605 = vmatpush.bf16.msra.mxu1 %v1115_v19  ;;  %v1227_v58 = vor.u32 %v1327_v50, %v1224_v51  ;;  %v1329_v59 = vld [vmem:[#allocation5 + $0x248] sm:$0xf0]  ;;  %v1282_v60 = vld [vmem:[#allocation5 + $0xd4] sm:$0xf]  ;;  %v1044_v61 = vld [vmem:[#allocation5 + $0xe4] sm:$0xf0]  ;;  %v1063_v0 = vor.u32 %v1289_v56, %v1062_v55 }
  0x29   :  { %624 = vmatpush.bf16.msra.mxu2 %v959_v20  ;;  %v1322_v62 = vld [vmem:[#allocation5 + $0x214] sm:$0xf]  ;;  %v1204_v63 = vld [vmem:[#allocation5 + $0x224] sm:$0xf0]  ;;  %v1223_v1 = vor.u32 %v1329_v59, %v1222_v57  ;;  %v1047_v2 = vor.u32 %v1282_v60, %v1044_v61  ;;  %v1042_v3 = vld [vmem:[#allocation5 + $0xd0] sm:$0xf] }
  0x2a   :  { %643 = vmatpush.bf16.msra.mxu3 %v1119_v24  ;;  %v1284_v4 = vld [vmem:[#allocation5 + $0xe0] sm:$0xf0]  ;;  %v1202_v5 = vld [vmem:[#allocation5 + $0x210] sm:$0xf]  ;;  %v1207_v6 = vor.u32 %v1322_v62, %v1204_v63  ;;  %v1277_v8 = vld [vmem:[#allocation5 + $0xac] sm:$0xf] }
  0x2b   :  { %587 = vmatpush.bf16.msra.mxu0 %v935_v31  ;;  %v1324_v7 = vld [vmem:[#allocation5 + $0x220] sm:$0xf0]  ;;  %v1024_v9 = vld [vmem:[#allocation5 + $0xbc] sm:$0xf0]  ;;  %v1317_v10 = vld [vmem:[#allocation5 + $0x1ec] sm:$0xf]  ;;  %v1043_v12 = vor.u32 %v1284_v4, %v1042_v3 }
  0x2c   :  { %606 = vmatpush.bf16.msra.mxu1 %v1095_v35  ;;  %v1184_v11 = vld [vmem:[#allocation5 + $0x1fc] sm:$0xf0]  ;;  %v1022_v13 = vld [vmem:[#allocation5 + $0xa8] sm:$0xf]  ;;  %v1203_v14 = vor.u32 %v1324_v7, %v1202_v5  ;;  %v1027_v15 = vor.u32 %v1277_v8, %v1024_v9  ;;  %v1279_v16 = vld [vmem:[#allocation5 + $0xb8] sm:$0xf0] }
  0x2d   :  { %625 = vmatpush.bf16.msra.mxu2 %v939_v36  ;;  %v1182_v17 = vld [vmem:[#allocation5 + $0x1e8] sm:$0xf]  ;;  %v1319_v18 = vld [vmem:[#allocation5 + $0x1f8] sm:$0xf0]  ;;  %v1187_v19 = vor.u32 %v1317_v10, %v1184_v11  ;;  %v926_v20 = vld [vmem:[#allocation2 + $0x10] sm:$0xf]  ;;  %v1023_v26 = vor.u32 %v1279_v16, %v1022_v13 }
  0x2e   :  { %644 = vmatpush.bf16.msra.mxu3 %v1099_v39  ;;  %588 = vmatmul.bf16.vlgmr.msra.gmra.mxu0 %v1481_v44  ;;  %v1272_v21 = vld [vmem:[#allocation5 + $0x84] sm:$0xf]  ;;  %v1004_v22 = vld [vmem:[#allocation5 + $0x94] sm:$0xf0]  ;;  %v1254_v27 = vld [vmem:[#allocation2 + $0x14] sm:$0xf]  ;;  %v1183_v29 = vor.u32 %v1319_v18, %v1182_v17 }
  0x2f   :  { %607 = vmatmul.bf16.vlgmr.msra.gmra.mxu1 %v1483_v49  ;;  %656 = vmatpush.bf16.msrb.mxu0 %v1083_v52  ;;  %v1255_v23 = vld [vmem:[#allocation2 + $0x14] sm:$0xf0]  ;;  %v1312_v24 = vld [vmem:[#allocation5 + $0x1c4] sm:$0xf]  ;;  %v928_v28 = vld [vmem:[#allocation2 + $0x18] sm:$0xf0]  ;;  %v1007_v30 = vor.u32 %v1272_v21, %v1004_v22 }
  0x30   :  { %626 = vmatmul.bf16.vlgmr.msra.gmra.mxu2 %v1481_v44  ;;  %675 = vmatpush.bf16.msrb.mxu1 %v1243_v53  ;;  %v1164_v25 = vld [vmem:[#allocation5 + $0x1d4] sm:$0xf0]  ;;  %v1002_v31 = vld [vmem:[#allocation5 + $0x80] sm:$0xf]  ;;  %v1274_v32 = vld [vmem:[#allocation5 + $0x90] sm:$0xf0]  ;;  %v1489_v34 = vor.u32 %v1255_v23, %v926_v20  ;;  %v1491_v39 = vor.u32 %v1254_v27, %v928_v28 }
  0x31   :  { %694 = vmatpush.bf16.msrb.mxu2 %v1087_v40  ;;  %645 = vmatmul.bf16.vlgmr.msra.gmra.mxu3 %v1483_v49  ;;  %v1162_v33 = vld [vmem:[#allocation5 + $0x1c0] sm:$0xf]  ;;  %v1167_v35 = vor.u32 %v1312_v24, %v1164_v25  ;;  %v1314_v36 = vld [vmem:[#allocation5 + $0x1d0] sm:$0xf0]  ;;  %v1267_v37 = vld [vmem:[#allocation5 + $0x5c] sm:$0xf]  ;;  %v1003_v42 = vor.u32 %v1274_v32, %v1002_v31 }
  0x32   :  { %713 = vmatpush.bf16.msrb.mxu3 %v1247_v45  ;;  %v984_v38 = vld [vmem:[#allocation5 + $0x6c] sm:$0xf0]  ;;  %v1307_v40 = vld [vmem:[#allocation5 + $0x19c] sm:$0xf]  ;;  %v1163_v43 = vor.u32 %v1314_v36, %v1162_v33  ;;  %v982_v46 = vld [vmem:[#allocation5 + $0x58] sm:$0xf] }
  0x33   :  { %657 = vmatpush.bf16.msrb.mxu0 %v1063_v0  ;;  %v1144_v41 = vld [vmem:[#allocation5 + $0x1ac] sm:$0xf0]  ;;  %v987_v45 = vor.u32 %v1267_v37, %v984_v38  ;;  %v1269_v47 = vld [vmem:[#allocation5 + $0x68] sm:$0xf0]  ;;  %v1142_v48 = vld [vmem:[#allocation5 + $0x198] sm:$0xf] }
  0x34   :  { %676 = vmatpush.bf16.msrb.mxu1 %v1223_v1  ;;  %v1147_v50 = vor.u32 %v1307_v40, %v1144_v41  ;;  %v1309_v51 = vld [vmem:[#allocation5 + $0x1a8] sm:$0xf0]  ;;  %v1262_v52 = vld [vmem:[#allocation5 + $0x34] sm:$0xf]  ;;  %v964_v53 = vld [vmem:[#allocation5 + $0x44] sm:$0xf0]  ;;  %v983_v56 = vor.u32 %v1269_v47, %v982_v46 }
  0x35   :  { %695 = vmatpush.bf16.msrb.mxu2 %v1067_v54  ;;  %v1302_v54 = vld [vmem:[#allocation5 + $0x174] sm:$0xf]  ;;  %v1124_v55 = vld [vmem:[#allocation5 + $0x184] sm:$0xf0]  ;;  %v962_v57 = vld [vmem:[#allocation5 + $0x30] sm:$0xf]  ;;  %v967_v59 = vor.u32 %v1262_v52, %v964_v53 }
  0x36   :  { %714 = vmatpush.bf16.msrb.mxu3 %v1227_v58  ;;  %v1143_v58 = vor.u32 %v1309_v51, %v1142_v48  ;;  %v1264_v60 = vld [vmem:[#allocation5 + $0x40] sm:$0xf0]  ;;  %v1122_v61 = vld [vmem:[#allocation5 + $0x170] sm:$0xf]  ;;  %v1127_v63 = vor.u32 %v1302_v54, %v1124_v55  ;;  %v1257_v0 = vld [vmem:[#allocation5 + $0xc] sm:$0xf] }
  0x37   :  { %658 = vmatpush.bf16.msrb.mxu0 %v1043_v12  ;;  %v1304_v62 = vld [vmem:[#allocation5 + $0x180] sm:$0xf0]  ;;  %v944_v1 = vld [vmem:[#allocation5 + $0x1c] sm:$0xf0]  ;;  %v1090_v4 = vld [vmem:[#allocation5 + $0x128] sm:$0xf] }
  0x38   :  { %677 = vmatpush.bf16.msrb.mxu1 %v1203_v14  ;;  %v1104_v3 = vld [vmem:[#allocation5 + $0x15c] sm:$0xf0]  ;;  %v1295_v5 = vld [vmem:[#allocation5 + $0x138] sm:$0xf0]  ;;  %v1250_v7 = vld [vmem:[#allocation5 + $0x268] sm:$0xf]  ;;  %v1123_v9 = vor.u32 %v1304_v62, %v1122_v61  ;;  %v947_v10 = vor.u32 %v1257_v0, %v944_v1 }
  0x39   :  { %696 = vmatpush.bf16.msrb.mxu2 %v1047_v2  ;;  %v1297_v2 = vld [vmem:[#allocation5 + $0x14c] sm:$0xf]  ;;  %v1335_v8 = vld [vmem:[#allocation5 + $0x278] sm:$0xf0]  ;;  %v942_v11 = vld [vmem:[#allocation5 + $0x8] sm:$0xf]  ;;  %v1091_v16 = vor.u32 %v1295_v5, %v1090_v4 }
  0x3a   :  { %715 = vmatpush.bf16.msrb.mxu3 %v1207_v6  ;;  %v963_v6 = vor.u32 %v1264_v60, %v962_v57  ;;  %v1259_v12 = vld [vmem:[#allocation5 + $0x18] sm:$0xf0]  ;;  %v1107_v13 = vor.u32 %v1297_v2, %v1104_v3  ;;  %v1102_v14 = vld [vmem:[#allocation5 + $0x148] sm:$0xf]  ;;  %v1251_v17 = vor.u32 %v1335_v8, %v1250_v7  ;;  %v1070_v18 = vld [vmem:[#allocation5 + $0x100] sm:$0xf] }
  0x3b   :  { %659 = vmatpush.bf16.msrb.mxu0 %v1023_v26  ;;  %v943_v20 = vor.u32 %v1259_v12, %v942_v11  ;;  %v1230_v23 = vld [vmem:[#allocation5 + $0x240] sm:$0xf]  ;;  %v1330_v24 = vld [vmem:[#allocation5 + $0x250] sm:$0xf0]  ;;  %v1050_v25 = vld [vmem:[#allocation5 + $0xd8] sm:$0xf] }
  0x3c   :  { %678 = vmatpush.bf16.msrb.mxu1 %v1183_v29  ;;  %v1285_v26 = vld [vmem:[#allocation5 + $0xe8] sm:$0xf0]  ;;  %v1231_v27 = vor.u32 %v1330_v24, %v1230_v23  ;;  %v1210_v29 = vld [vmem:[#allocation5 + $0x218] sm:$0xf]  ;;  %v1030_v31 = vld [vmem:[#allocation5 + $0xb0] sm:$0xf] }
  0x3d   :  { %697 = vmatpush.bf16.msrb.mxu2 %v1027_v15  ;;  %v1299_v15 = vld [vmem:[#allocation5 + $0x158] sm:$0xf0]  ;;  %v1051_v28 = vor.u32 %v1285_v26, %v1050_v25  ;;  %v1280_v32 = vld [vmem:[#allocation5 + $0xc0] sm:$0xf0]  ;;  %v1190_v36 = vld [vmem:[#allocation5 + $0x1f0] sm:$0xf] }
  0x3e   :  { %716 = vmatpush.bf16.msrb.mxu3 %v1187_v19  ;;  %593 = vmatmul.bf16.gmra.mxu0 %v1489_v34  ;;  %v1290_v19 = vld [vmem:[#allocation5 + $0x110] sm:$0xf0]  ;;  %v1103_v21 = vor.u32 %v1299_v15, %v1102_v14  ;;  %v1320_v37 = vld [vmem:[#allocation5 + $0x200] sm:$0xf0]  ;;  %v1010_v38 = vld [vmem:[#allocation5 + $0x88] sm:$0xf] }
  0x3f   :  { %612 = vmatmul.bf16.gmra.mxu1 %v1491_v39  ;;  %660 = vmatpush.bf16.msrb.mxu0 %v1003_v42  ;;  %v1071_v22 = vor.u32 %v1290_v19, %v1070_v18  ;;  %v1275_v40 = vld [vmem:[#allocation5 + $0x98] sm:$0xf0]  ;;  %v1191_v41 = vor.u32 %v1320_v37, %v1190_v36  ;;  %v990_v46 = vld [vmem:[#allocation5 + $0x60] sm:$0xf]  ;;  %v1270_v47 = vld [vmem:[#allocation5 + $0x70] sm:$0xf0] }
  0x40   :  { %631 = vmatmul.bf16.gmra.mxu2 %v1489_v34  ;;  %679 = vmatpush.bf16.msrb.mxu1 %v1163_v43  ;;  %v1011_v42 = vor.u32 %v1275_v40, %v1010_v38  ;;  %v1170_v43 = vld [vmem:[#allocation5 + $0x1c8] sm:$0xf]  ;;  %v1150_v51 = vld [vmem:[#allocation5 + $0x1a0] sm:$0xf]  ;;  %v1310_v52 = vld [vmem:[#allocation5 + $0x1b0] sm:$0xf0] }
  0x41   :  { %698 = vmatpush.bf16.msrb.mxu2 %v1007_v30  ;;  %650 = vmatmul.bf16.gmra.mxu3 %v1491_v39  ;;  %v1325_v30 = vld [vmem:[#allocation5 + $0x228] sm:$0xf0]  ;;  %v970_v53 = vld [vmem:[#allocation5 + $0x38] sm:$0xf]  ;;  %v1151_v55 = vor.u32 %v1310_v52, %v1150_v51  ;;  %v1260_v60 = vld [vmem:[#allocation5 + $0x20] sm:$0xf0] }
  0x42   :  { %717 = vmatpush.bf16.msrb.mxu3 %v1167_v35  ;;  %v1211_v33 = vor.u32 %v1325_v30, %v1210_v29  ;;  %v1031_v35 = vor.u32 %v1280_v32, %v1030_v31  ;;  %v1265_v54 = vld [vmem:[#allocation5 + $0x48] sm:$0xf0]  ;;  %v1130_v57 = vld [vmem:[#allocation5 + $0x178] sm:$0xf]  ;;  %v1300_v0 = vld [vmem:[#allocation5 + $0x160] sm:$0xf0] }
  0x43   :  { %661 = vmatpush.bf16.msrb.mxu0 %v983_v56  ;;  %v971_v56 = vor.u32 %v1265_v54, %v970_v53  ;;  %vm883_vm1 = vcmask 7168   ;;  %s904_s23 = sshll.u32 %s1517_s2, 4  ;;  %s1459_s27 = smov [#allocation7]   ;;  %s905_s23 = int_to_ptr.hbm [resolvable:$true] %s904_s23 }
  0x44   :  { %680 = vmatpush.bf16.msrb.mxu1 %v1143_v58  ;;  %v1305_v58 = vld [vmem:[#allocation5 + $0x188] sm:$0xf0] }
  0x45   :  { %699 = vmatpush.bf16.msrb.mxu2 %v987_v45  ;;  %v1315_v45 = vld [vmem:[#allocation5 + $0x1d8] sm:$0xf0]  ;;  %v1131_v61 = vor.u32 %v1305_v58, %v1130_v57 }
  0x46   :  { %718 = vmatpush.bf16.msrb.mxu3 %v1147_v50  ;;  %v1171_v48 = vor.u32 %v1315_v45, %v1170_v43  ;;  %v991_v50 = vor.u32 %v1270_v47, %v990_v46 }
  0x47   :  { %662 = vmatpush.bf16.msrb.mxu0 %v963_v6 }
  0x48   :  { %681 = vmatpush.bf16.msrb.mxu1 %v1123_v9 }
  0x49   :  { %700 = vmatpush.bf16.msrb.mxu2 %v967_v59  ;;  %v950_v59 = vld [vmem:[#allocation5 + $0x10] sm:$0xf] }
  0x4a   :  { %719 = vmatpush.bf16.msrb.mxu3 %v1127_v63  ;;  %v951_v62 = vor.u32 %v1260_v60, %v950_v59  ;;  %v1110_v63 = vld [vmem:[#allocation5 + $0x150] sm:$0xf] }
  0x4b   :  { %663 = vmatpush.bf16.msrb.mxu0 %v943_v20  ;;  %v1111_v1 = vor.u32 %v1300_v0, %v1110_v63 }
  0x4c   :  { %682 = vmatpush.bf16.msrb.mxu1 %v1103_v21 }
  0x4d   :  { %701 = vmatpush.bf16.msrb.mxu2 %v947_v10 }
  0x4e   :  { %720 = vmatpush.bf16.msrb.mxu3 %v1107_v13  ;;  %664 = vmatmul.bf16.vlgmr.msrb.gmra.mxu0 %v1481_v44 }
  0x4f   :  { %732 = vmatpush.bf16.msra.mxu0 %v1091_v16  ;;  %683 = vmatmul.bf16.vlgmr.msrb.gmra.mxu1 %v1483_v49 }
  0x50   :  { %751 = vmatpush.bf16.msra.mxu1 %v1251_v17  ;;  %702 = vmatmul.bf16.vlgmr.msrb.gmra.mxu2 %v1481_v44 }
  0x51   :  { %1336 = vmatpush.bf16.msra.mxu2 %v1091_v16  ;;  %721 = vmatmul.bf16.vlgmr.msrb.gmra.mxu3 %v1483_v49 }
  0x52   :  { %1344 = vmatpush.bf16.msra.mxu3 %v1251_v17 }
  0x53   :  { %733 = vmatpush.bf16.msra.mxu0 %v1071_v22 }
  0x54   :  { %752 = vmatpush.bf16.msra.mxu1 %v1231_v27 }
  0x55   :  { %1337 = vmatpush.bf16.msra.mxu2 %v1071_v22 }
  0x56   :  { %1345 = vmatpush.bf16.msra.mxu3 %v1231_v27 }
  0x57   :  { %734 = vmatpush.bf16.msra.mxu0 %v1051_v28 }
  0x58   :  { %753 = vmatpush.bf16.msra.mxu1 %v1211_v33 }
  0x59   :  { %1338 = vmatpush.bf16.msra.mxu2 %v1051_v28 }
  0x5a   :  { %1346 = vmatpush.bf16.msra.mxu3 %v1211_v33 }
  0x5b   :  { %735 = vmatpush.bf16.msra.mxu0 %v1031_v35 }
  0x5c   :  { %754 = vmatpush.bf16.msra.mxu1 %v1191_v41 }
  0x5d   :  { %1339 = vmatpush.bf16.msra.mxu2 %v1031_v35 }
  0x5e   :  { %1347 = vmatpush.bf16.msra.mxu3 %v1191_v41  ;;  %669 = vmatmul.bf16.gmra.mxu0 %v1489_v34 }
  0x5f   :  { %736 = vmatpush.bf16.msra.mxu0 %v1011_v42  ;;  %688 = vmatmul.bf16.gmra.mxu1 %v1491_v39 }
  0x60   :  { %755 = vmatpush.bf16.msra.mxu1 %v1171_v48  ;;  %707 = vmatmul.bf16.gmra.mxu2 %v1489_v34 }
  0x61   :  { %1340 = vmatpush.bf16.msra.mxu2 %v1011_v42  ;;  %726 = vmatmul.bf16.gmra.mxu3 %v1491_v39 }
  0x62   :  { %1348 = vmatpush.bf16.msra.mxu3 %v1171_v48 }
  0x63   :  { %737 = vmatpush.bf16.msra.mxu0 %v991_v50 }
  0x64   :  { %756 = vmatpush.bf16.msra.mxu1 %v1151_v55 }
  0x65   :  { %1341 = vmatpush.bf16.msra.mxu2 %v991_v50 }
  0x66   :  { %1349 = vmatpush.bf16.msra.mxu3 %v1151_v55 }
  0x67   :  { %738 = vmatpush.bf16.msra.mxu0 %v971_v56 }
  0x68   :  { %757 = vmatpush.bf16.msra.mxu1 %v1131_v61 }
  0x69   :  { %1342 = vmatpush.bf16.msra.mxu2 %v971_v56 }
  0x6a   :  { %1350 = vmatpush.bf16.msra.mxu3 %v1131_v61 }
  0x6b   :  { %739 = vmatpush.bf16.msra.mxu0 %v951_v62 }
  0x6c   :  { %758 = vmatpush.bf16.msra.mxu1 %v1111_v1 }
  0x6d   :  { %1343 = vmatpush.bf16.msra.mxu2 %v951_v62 }
  0x6e   :  { %1351 = vmatpush.bf16.msra.mxu3 %v1111_v1  ;;  %740 = vmatmul.bf16.vlgmr.msra.gmra.mxu0 %v1481_v44 }
  0x6f   :  { %759 = vmatmul.bf16.vlgmr.msra.gmra.mxu1 %v1483_v49 }
  0x70   :  { %745 = vmatmul.bf16.vlgmr.msra.gmra.mxu2 %v1489_v34 }
  0x71   :  { %764 = vmatmul.bf16.vlgmr.msra.gmra.mxu3 %v1491_v39 }
  0xab   :  { %v589_v2 = vpop.f32.mrf.mxu0 }
  0xac   :  { %v608_v3 = vpop.f32.mrf.mxu1 }
  0xad   :  { %v609_v20 = vadd.f32 %v608_v3, %v589_v2 }
  0xaf   :  { %v770_v24 = vadd.f32 1e-05, %v609_v20 }
  0xb1   :  { %v774_v36 = vmul.f32 %v770_v24, %v770_v24 }
  0xb3   :  { %v627_v4 = vpop.f32.mrf.mxu2  ;;  %v591_v6 = vpop.f32.mrf.mxu0 }
  0xb4   :  { %v646_v5 = vpop.f32.mrf.mxu3  ;;  %v610_v7 = vpop.f32.mrf.mxu1 }
  0xb5   :  { %v647_v21 = vadd.f32 %v646_v5, %v627_v4  ;;  %v611_v23 = vadd.f32 %v610_v7, %v591_v6 }
  0xb7   :  { %v771_v29 = vadd.f32 1e-05, %v647_v21  ;;  %v772_v33 = vadd.f32 1e-05, %v611_v23 }
  0xb9   :  { %v775_v42 = vmul.f32 %v771_v29, %v771_v29  ;;  %v776_v47 = vmul.f32 %v772_v33, %v772_v33 }
  0xbb   :  { %v629_v8 = vpop.f32.mrf.mxu2  ;;  %v594_v10 = vpop.f32.mrf.mxu0 }
  0xbc   :  { %v648_v9 = vpop.f32.mrf.mxu3  ;;  %v613_v11 = vpop.f32.mrf.mxu1 }
  0xbd   :  { %v614_v30 = vadd.f32 %v613_v11, %v594_v10  ;;  %v649_v40 = vadd.f32 %v648_v9, %v629_v8 }
  0xbf   :  { %v790_v43 = vmul.f32 %v614_v30, %v614_v30  ;;  %v773_v54 = vadd.f32 1e-05, %v649_v40 }
  0xc1   :  { %v777_v4 = vmul.f32 %v773_v54, %v773_v54 }
  0xc3   :  { %v632_v12 = vpop.f32.mrf.mxu2  ;;  %v596_v14 = vpop.f32.mrf.mxu0 }
  0xc4   :  { %v651_v13 = vpop.f32.mrf.mxu3  ;;  %v615_v44 = vpop.f32.mrf.mxu1 }
  0xc5   :  { %v652_v48 = vadd.f32 %v651_v13, %v632_v12  ;;  %v616_v57 = vadd.f32 %v615_v44, %v596_v14 }
  0xc7   :  { %v791_v61 = vmul.f32 %v652_v48, %v652_v48  ;;  %v792_v6 = vmul.f32 %v616_v57, %v616_v57 }
  0xcb   :  { %v634_v15 = vpop.f32.mrf.mxu2  ;;  %v665_v16 = vpop.f32.mrf.mxu0 }
  0xcc   :  { %v653_v34 = vpop.f32.mrf.mxu3  ;;  %v684_v49 = vpop.f32.mrf.mxu1 }
  0xcd   :  { %v685_v22 = vadd.f32 %v684_v49, %v665_v16  ;;  %v654_v9 = vadd.f32 %v653_v34, %v634_v15 }
  0xcf   :  { %v778_v31 = vmul.f32 %v685_v22, %v685_v22 }
  0xd1   :  { %v782_v45 = vadd.f32 %v778_v31, %v774_v36 }
  0xd3   :  { %v703_v17 = vpop.f32.mrf.mxu2  ;;  %v667_v18 = vpop.f32.mrf.mxu0  ;;  %v786_v58 = vadd.f32 1e-05, %v782_v45 }
  0xd4   :  { %v722_v39 = vpop.f32.mrf.mxu3  ;;  %v686_v19 = vpop.f32.mrf.mxu1 }
  0xd5   :  { %v723_v25 = vadd.f32 %v722_v39, %v703_v17  ;;  %v687_v27 = vadd.f32 %v686_v19, %v667_v18  ;;  %1363 = vlog2.f32 %v786_v58  ;;  %v793_v17 = vmul.f32 %v654_v9, %v654_v9 }
  0xd6   :  { %v847_v18 = vlaneseq }
  0xd7   :  { %v779_v37 = vmul.f32 %v723_v25, %v723_v25  ;;  %v780_v41 = vmul.f32 %v687_v27, %v687_v27 }
  0xd9   :  { %v783_v50 = vadd.f32 %v779_v37, %v775_v42  ;;  %v784_v55 = vadd.f32 %v780_v41, %v776_v47 }
  0xdb   :  { %v705_v26 = vpop.f32.mrf.mxu2  ;;  %v670_v32 = vpop.f32.mrf.mxu0  ;;  %v787_v0 = vadd.f32 1e-05, %v783_v50  ;;  %v788_v5 = vadd.f32 1e-05, %v784_v55 }
  0xdc   :  { %v724_v28 = vpop.f32.mrf.mxu3  ;;  %v689_v35 = vpop.f32.mrf.mxu1 }
  0xdd   :  { %v690_v38 = vadd.f32 %v689_v35, %v670_v32  ;;  %v725_v51 = vadd.f32 %v724_v28, %v705_v26  ;;  %v1364_v19 = vpop.eup %1363  ;;  %v848_v26 = vshrl.u32 %v847_v18, 7 }
  0xde   :  { %v807_v37 = vmul.f32 0.6931472, %v1364_v19 }
  0xdf   :  { %v794_v46 = vmul.f32 %v690_v38, %v690_v38  ;;  %v781_v1 = vmul.f32 %v725_v51, %v725_v51 }
  0xe1   :  { %v798_v52 = vadd.f32 %v794_v46, %v790_v43  ;;  %v785_v10 = vadd.f32 %v781_v1, %v777_v4  ;;  %v849_v46 = vadd.s32 8, %v848_v26 }
  0xe3   :  { %v708_v53 = vpop.f32.mrf.mxu2  ;;  %v672_v60 = vpop.f32.mrf.mxu0  ;;  %v802_v62 = vadd.f32 1e-05, %v798_v52  ;;  %v789_v20 = vadd.f32 1e-05, %v785_v10  ;;  %vm854_vm0 = vcmp.lt.s32.totalorder %v849_v46, 10 }
  0xe4   :  { %v727_v56 = vpop.f32.mrf.mxu3  ;;  %v691_v63 = vpop.f32.mrf.mxu1 }
  0xe5   :  { %v728_v59 = vadd.f32 %v727_v56, %v708_v53  ;;  %v692_v3 = vadd.f32 %v691_v63, %v672_v60  ;;  %1365 = vlog2.f32 %v802_v62 }
  0xe6   :  { %1367 = vlog2.f32 %v787_v0 }
  0xe7   :  { %v795_v2 = vmul.f32 %v728_v59, %v728_v59  ;;  %v796_v8 = vmul.f32 %v692_v3, %v692_v3  ;;  %1369 = vlog2.f32 %v788_v5 }
  0xe9   :  { %v799_v7 = vadd.f32 %v795_v2, %v791_v61  ;;  %v800_v12 = vadd.f32 %v796_v8, %v792_v6 }
  0xeb   :  { %v803_v11 = vadd.f32 1e-05, %v799_v7  ;;  %v710_v13 = vpop.f32.mrf.mxu2  ;;  %v804_v44 = vadd.f32 1e-05, %v800_v12  ;;  %v741_v49 = vpop.f32.mrf.mxu0 }
  0xec   :  { %v729_v14 = vpop.f32.mrf.mxu3  ;;  %v760_v39 = vpop.f32.mrf.mxu1 }
  0xed   :  { %1371 = vlog2.f32 %v803_v11  ;;  %v730_v16 = vadd.f32 %v729_v14, %v710_v13  ;;  %v761_v15 = vadd.f32 %v760_v39, %v741_v49  ;;  %v1366_v34 = vpop.eup %1365 }
  0xee   :  { %1373 = vlog2.f32 %v804_v44  ;;  %v1368_v22 = vpop.eup %1367  ;;  %v815_v28 = vmul.f32 0.6931472, %v1366_v34 }
  0xef   :  { %v797_v21 = vmul.f32 %v730_v16, %v730_v16  ;;  %v826_v24 = vadd.f32 1e-05, %v761_v15  ;;  %v1370_v25 = vpop.eup %1369  ;;  %1375 = vlog2.f32 %v789_v20  ;;  %v809_v32 = vmul.f32 0.6931472, %v1368_v22 }
  0xf0   :  { %v811_v41 = vmul.f32 0.6931472, %v1370_v25  ;;  %v822_v51 = vsub.f32 %v807_v37, %v815_v28 }
  0xf1   :  { %v801_v23 = vadd.f32 %v797_v21, %v793_v17  ;;  %v828_v30 = vmul.f32 %v826_v24, %v826_v24 }
  0xf2   :  { %v855_v61 = vmul.f32 %v822_v51, %v822_v51 }
  0xf3   :  { %v1372_v27 = vpop.eup %1371  ;;  %v805_v29 = vadd.f32 1e-05, %v801_v23  ;;  %v746_v31 = vpop.f32.mrf.mxu2  ;;  %v830_v47 = vadd.f32 1e-05, %v828_v30 }
  0xf4   :  { %v817_v33 = vmul.f32 0.6931472, %v1372_v27  ;;  %v765_v35 = vpop.f32.mrf.mxu3  ;;  %v1374_v36 = vpop.eup %1373 }
  0xf5   :  { %1377 = vlog2.f32 %v805_v29  ;;  %v766_v38 = vadd.f32 %v765_v35, %v746_v31  ;;  %v743_v40 = vpop.f32.mrf.mxu0  ;;  %v819_v42 = vmul.f32 0.6931472, %v1374_v36  ;;  %v762_v43 = vpop.f32.mrf.mxu1 }
  0xf6   :  { %v823_v45 = vsub.f32 %v809_v32, %v817_v33  ;;  %v763_v50 = vadd.f32 %v762_v43, %v743_v40  ;;  %v1376_v53 = vpop.eup %1375  ;;  %1379 = vlog2.f32 %v830_v47 }
  0xf7   :  { %v836_v48 = vmul.f32 %v766_v38, %v766_v38  ;;  %v824_v52 = vsub.f32 %v811_v41, %v819_v42  ;;  %v813_v63 = vmul.f32 0.6931472, %v1376_v53 }
  0xf8   :  { %v827_v55 = vadd.f32 1e-05, %v763_v50  ;;  %v856_v56 = vmul.f32 %v823_v45, %v823_v45 }
  0xf9   :  { %v838_v54 = vadd.f32 1e-05, %v836_v48  ;;  %v857_v57 = vmul.f32 %v824_v52, %v824_v52 }
  0xfa   :  { %v829_v59 = vmul.f32 %v827_v55, %v827_v55  ;;  %v871_v3 = vadd.f32 %v856_v56, %v855_v61 }
  0xfb   :  { %v1378_v58 = vpop.eup %1377  ;;  %v748_v60 = vpop.f32.mrf.mxu2  ;;  %1381 = vlog2.f32 %v838_v54  ;;  %v865_v5 = vsel %vm854_vm0, %v857_v57, 0.0 }
  0xfc   :  { %v767_v62 = vpop.f32.mrf.mxu3  ;;  %v821_v0 = vmul.f32 0.6931472, %v1378_v58  ;;  %v831_v1 = vadd.f32 1e-05, %v829_v59  ;;  %v1380_v8 = vpop.eup %1379  ;;  %v872_v10 = vadd.f32 %v871_v3, %v865_v5 }
  0xfd   :  { %v768_v2 = vadd.f32 %v767_v62, %v748_v60  ;;  %v833_v14 = vmul.f32 0.6931472, %v1380_v8 }
  0xfe   :  { %v825_v4 = vsub.f32 %v813_v63, %v821_v0  ;;  %1383 = vlog2.f32 %v831_v1 }
  0xff   :  { %v837_v6 = vmul.f32 %v768_v2, %v768_v2 }
 0x100   :  { %v858_v7 = vmul.f32 %v825_v4, %v825_v4 }
 0x101   :  { %v839_v9 = vadd.f32 1e-05, %v837_v6  ;;  %v1382_v11 = vpop.eup %1381 }
 0x102   :  { %v866_v12 = vsel %vm854_vm0, %v858_v7, 0.0  ;;  %v841_v44 = vmul.f32 0.6931472, %v1382_v11 }
 0x103   :  { %1385 = vlog2.f32 %v839_v9  ;;  %v873_v13 = vadd.f32 %v872_v10, %v866_v12 }
 0x104   :  { %v1384_v16 = vpop.eup %1383  ;;  %v844_v17 = vsub.f32 %v833_v14, %v841_v44 }
 0x105   :  { %874 = vadd.xlane.f32.xlu0 %v873_v13  ;;  %v835_v39 = vmul.f32 0.6931472, %v1384_v16 }
 0x106   :  { %v867_v20 = vmul.f32 %v844_v17, %v844_v17 }
 0x108   :  { %v884_v34 = vsel %vm883_vm1, %v867_v20, 0.0 }
 0x109   :  { %v1386_v49 = vpop.eup %1385 }
 0x10a   :  { %v843_v18 = vmul.f32 0.6931472, %v1386_v49 }
 0x10c   :  { %v845_v19 = vsub.f32 %v835_v39, %v843_v18 }
 0x10e   :  { %v868_v21 = vmul.f32 %v845_v19, %v845_v19 }
 0x110   :  { %v870_v15 = vsel %vm854_vm0, %v868_v21, 0.0 }
 0x111   :  { %v885_v22 = vsel %vm883_vm1, %v870_v15, 0.0 }
 0x112   :  { %v886_v23 = vadd.f32 %v885_v22, %v884_v34 }
 0x114   :  { %887 = vadd.xlane.f32.xlu0 %v886_v23 }
 0x178   :  { %v875_v24 = vpop.xlane.xlu0 %874 }
 0x179   :  { %v876_v25 = vrot.slane %v875_v24, 4 }
 0x17b   :  { %v877_v26 = vadd.f32 %v876_v25, %v875_v24 }
 0x17d   :  { %v878_v27 = vrot.slane %v877_v26, 2 }
 0x17f   :  { %v879_v28 = vadd.f32 %v878_v27, %v877_v26 }
 0x181   :  { %v880_v29 = vrot.slane %v879_v28, 1 }
 0x183   :  { %v881_v30 = vadd.f32 %v880_v29, %v879_v28 }
 0x185   :  { %1352 = vpush %v881_v30 }
 0x187   :  { %v888_v31 = vpop.xlane.xlu0 %887 }
 0x188   :  { %v889_v32 = vrot.slane %v888_v31, 4 }
 0x18a   :  { %v890_v33 = vadd.f32 %v889_v32, %v888_v31 }
 0x18c   :  { %v891_v35 = vrot.slane %v890_v33, 2 }
 0x18e   :  { %v892_v36 = vadd.f32 %v891_v35, %v890_v33 }
 0x190   :  { %v893_v37 = vrot.slane %v892_v36, 1 }
 0x192   :  { %v894_v38 = vadd.f32 %v893_v37, %v892_v36 }
 0x194   :  { %1354 = vpush %v894_v38 }
 0x1b6   :  { %s1353_s24 = spop %1352 }
 0x1c5   :  { %s1355_s25 = spop %1354 }
 0x1c6   :  { %s896_s26 = sadd.f32 %s1355_s25, %s1353_s24 }
 0x1c8   :  { %898 = sst [smem:[#allocation7]] %s896_s26 }
 0x1c9   :  { %907 = dma.smem_to_hbm %s1459_s27, 16, %s905_s23, [#allocation4]  }
 0x1ca   :  { %1451 = dma.done.wait [#allocation4], 16  }
 0x1cb   :  { %1452 = vsyncadd [#allocation4], 4294967280 }
 0x1cc   :  { %912 = sfence }
 0x1cd   :  { %913 = vsyncpa [#allocation3], 1 }
 0x1ce   :  { %914 = vsyncpa [#allocation6], 1 }
 0x1cf   :  { %915 = vsyncpa [#allocation4], 1 }

</bundles_post_ra>
